<compile_context>
chip_gen: v5e
topology: v5e:2x2
jax: 0.10.0
libtpu: 0.0.40
codegen_flags: <defaults>
</compile_context>

<pallas_src>
import functools

import jax
import jax.numpy as jnp
from jax.experimental import pallas as pl
from jax.experimental.pallas import tpu as pltpu


def _round_up(x: int, m: int) -> int:
    return ((x + m - 1) // m) * m


def _pick_tile(dim: int, cap: int, unit: int, min_blocks: int = 1) -> int:
    """Largest tile (multiple of `unit`, <= cap) minimizing padding of `dim`,
    requiring at least `min_blocks` grid blocks when that is feasible."""
    dim_u = _round_up(dim, unit)
    cap_u = max(unit, (min(cap, dim_u) // unit) * unit)
    best_key, best_t = None, unit
    for t in range(unit, cap_u + 1, unit):
        padded = _round_up(dim, t)
        blocks = padded // t
        if blocks < min_blocks and dim_u >= min_blocks * unit:
            continue                      # could split but this tile doesn't
        key = (padded - dim, -t)          # min padding first, then largest tile
        if best_key is None or key < best_key:
            best_key, best_t = key, t
    return best_t


def plan_tiles(batch, in_features, out_features, mxu_dtype=jnp.bfloat16,
               *, tm_cap=512, tn_cap=512, tk_cap=2048):
    """Pick (tm, tn, tk).  bf16 x tiles need 16-row alignment, f32 need 8."""
    sub = 16 if jnp.dtype(mxu_dtype).itemsize == 2 else 8
    tm_e = _pick_tile(batch, tm_cap, unit=sub)
    tk_e = _pick_tile(in_features, tk_cap, unit=128)
    m_blocks = _round_up(batch, tm_e) // tm_e
    # v7x megacore: if M collapses to one block, make sure N still splits into
    # >=2 parallel blocks (when N is large enough) so both TensorCores get work.
    tn_e = _pick_tile(out_features, tn_cap, unit=128,
                      min_blocks=2 if m_blocks == 1 else 1)
    return tm_e, tn_e, tk_e


def prepare_params(weight, bias, *, tn_e, tk_e, mxu_dtype=jnp.bfloat16):
    """One-time (per model) weight/bias preparation: transpose PyTorch [out,in]
    to [K, N], cast to the MXU dtype and zero-pad to tile multiples.  Keeps the
    per-call forward free of weight transposes/pads."""
    N, K = weight.shape
    Kp, Np = _round_up(K, tk_e), _round_up(N, tn_e)
    w_kn = jnp.asarray(weight).T.astype(mxu_dtype)          # [K, N], transposed once
    if (Kp, Np) != (K, N):
        w_kn = jnp.pad(w_kn, ((0, Kp - K), (0, Np - N)))
    b = jnp.asarray(bias, jnp.float32)
    if Np != N:
        b = jnp.pad(b, (0, Np - N))
    return w_kn, b.reshape(1, Np)


def _linear_kernel(x_ref, w_ref, b_ref, o_ref):
    """One (i, j, k) grid step of y = x @ W_kn + b.

    x_ref: (tm, tk)  activation tile (bf16 or f32)
    w_ref: (tk, tn)  weight tile, already [K, N] layout (natural MXU contraction)
    b_ref: (1,  tn)  bias tile (f32)
    o_ref: (tm, tn)  f32 output tile, used directly as the resident accumulator
    """
    k = pl.program_id(2)

    @pl.when(k == 0)
    def _():
        o_ref[...] = jnp.zeros_like(o_ref)

    o_ref[...] += jnp.dot(x_ref[...], w_ref[...],
                          preferred_element_type=jnp.float32)

    @pl.when(k == pl.num_programs(2) - 1)
    def _():
        o_ref[...] += b_ref[...]          # bias added exactly once


@functools.partial(jax.jit,
                   static_argnames=("out_features", "tm_e", "tn_e", "tk_e"))
def drying_linear_forward(x, w_kn, bias2d, *, out_features, tm_e, tn_e, tk_e):
    """Forward pass of DryingLinearLayer.

    Args:
      x:       [B, in_features] float32 activations.
      w_kn:    [Kp, Np] prepared weight (see prepare_params; MXU dtype).
      bias2d:  [1, Np]  prepared bias (f32).
    Returns:
      [B, out_features] float32.
    """
    B, K = x.shape
    Kp, Np = w_kn.shape
    assert Kp % tk_e == 0 and Np % tn_e == 0 and bias2d.shape == (1, Np)
    assert K <= Kp and out_features <= Np

    mxu_dtype = w_kn.dtype
    itemsize = jnp.dtype(mxu_dtype).itemsize

    Bp = _round_up(B, tm_e)
    xp = x.astype(mxu_dtype)              # cast before padding (half the pad cost)
    if Bp != B or Kp != K:
        xp = jnp.pad(xp, ((0, Bp - B), (0, Kp - K)))

    grid = (Bp // tm_e, Np // tn_e, Kp // tk_e)
    m_blocks, n_blocks, _ = grid

    # Double-buffered input tiles + resident f32 output tile, with 2x margin,
    # capped at 48 MiB so it stays safe on v7x's 64 MiB per-core VMEM.
    footprint = (2 * (tm_e * tk_e + tk_e * tn_e) * itemsize
                 + 2 * tn_e * 4
                 + 2 * tm_e * tn_e * 4)
    vmem_limit = int(min(48 * 1024 * 1024,
                         max(32 * 1024 * 1024, 2 * footprint)))

    cost = pl.CostEstimate(
        flops=2 * Bp * Kp * Np,
        transcendentals=0,
        bytes_accessed=(Bp * Kp * itemsize * n_blocks    # x streamed per N block
                        + Kp * Np * itemsize * m_blocks  # W streamed per M block
                        + Np * 4 * m_blocks              # bias
                        + Bp * Np * 4))                  # output write

    out = pl.pallas_call(
        _linear_kernel,
        out_shape=jax.ShapeDtypeStruct((Bp, Np), jnp.float32),
        grid_spec=pltpu.PrefetchScalarGridSpec(
            num_scalar_prefetch=0,
            grid=grid,
            in_specs=[
                pl.BlockSpec((tm_e, tk_e), lambda i, j, k: (i, k)),  # x  [M, K]
                pl.BlockSpec((tk_e, tn_e), lambda i, j, k: (k, j)),  # W  [K, N]
                pl.BlockSpec((1, tn_e), lambda i, j, k: (0, j)),     # bias
            ],
            out_specs=pl.BlockSpec((tm_e, tn_e), lambda i, j, k: (i, j)),
        ),
        compiler_params=pltpu.CompilerParams(
            dimension_semantics=("parallel", "parallel", "arbitrary"),
            vmem_limit_bytes=vmem_limit,
        ),
        cost_estimate=cost,
    )(xp, w_kn, bias2d)

    if Bp != B or Np != out_features:
        out = out[:B, :out_features]
    return out


def init_drying_linear(key, in_features, out_features, dry_ratio=0.1):
    """Deterministic parameter init mirroring nn.Linear's default init,
    plus the dry_mask buffer from DryingLinearLayer.__init__."""
    kw, kb = jax.random.split(key)
    bound = 1.0 / jnp.sqrt(jnp.float32(in_features))
    weight = jax.random.uniform(
        kw, (out_features, in_features), jnp.float32, minval=-bound, maxval=bound)
    bias = jax.random.uniform(
        kb, (out_features,), jnp.float32, minval=-bound, maxval=bound)
    dry_count = int(out_features * dry_ratio)
    mask = jnp.ones((out_features,), jnp.float32)
    if dry_count > 0:
        mask = mask.at[-dry_count:].set(0.0)
    dry_mask = mask.reshape(-1, 1)  # buffer; unused in forward
    return weight, bias, dry_mask


if __name__ == "__main__":
    key = jax.random.PRNGKey(0)

    # --- Small demo layer consistent with the module -------------------------
    in_features, out_features, batch = 32, 16, 8
    kx, kp, key = jax.random.split(key, 3)
    weight, bias, dry_mask = init_drying_linear(kp, in_features, out_features,
                                                dry_ratio=0.1)
    x = jax.random.normal(kx, (batch, in_features), jnp.float32)
    y_ref = x @ weight.T + bias

    # f32 MXU path: exact vs the f32 reference.
    tm0, tn0, tk0 = plan_tiles(batch, in_features, out_features, jnp.float32)
    w_f32, b_f32 = prepare_params(weight, bias, tn_e=tn0, tk_e=tk0,
                                  mxu_dtype=jnp.float32)
    y = jax.block_until_ready(
        drying_linear_forward(x, w_f32, b_f32, out_features=out_features,
                              tm_e=tm0, tn_e=tn0, tk_e=tk0))
    assert y.shape == (batch, out_features)
    assert jnp.allclose(y, y_ref, atol=1e-5, rtol=1e-5)

    # bf16 MXU path (default / fast): relaxed tolerance vs the f32 reference.
    tm1, tn1, tk1 = plan_tiles(batch, in_features, out_features, jnp.bfloat16)
    w_bf, b_bf = prepare_params(weight, bias, tn_e=tn1, tk_e=tk1,
                                mxu_dtype=jnp.bfloat16)
    yb = jax.block_until_ready(
        drying_linear_forward(x, w_bf, b_bf, out_features=out_features,
                              tm_e=tm1, tn_e=tn1, tk_e=tk1))
    assert jnp.allclose(yb, y_ref, atol=3e-2, rtol=3e-2)

    # --- bf16 path on non-tile-multiple shapes (padding, multi-block N) ------
    B2, K2, N2 = 72, 1536, 272
    kx2, kw2, kb2 = jax.random.split(key, 3)
    x2 = jax.random.normal(kx2, (B2, K2), jnp.float32)
    w2 = jax.random.normal(kw2, (N2, K2), jnp.float32) * 0.02
    b2 = jax.random.normal(kb2, (N2,), jnp.float32)

    tm2, tn2, tk2 = plan_tiles(B2, K2, N2, jnp.bfloat16)
    w2_p, b2_p = prepare_params(w2, b2, tn_e=tn2, tk_e=tk2,
                                mxu_dtype=jnp.bfloat16)
    y2 = jax.block_until_ready(
        drying_linear_forward(x2, w2_p, b2_p, out_features=N2,
                              tm_e=tm2, tn_e=tn2, tk_e=tk2))
    y2_ref = x2 @ w2.T + b2
    assert y2.shape == (B2, N2)
    rel_err = float(jnp.linalg.norm(y2 - y2_ref) / jnp.linalg.norm(y2_ref))
    assert rel_err < 2e-2, rel_err

    # TODO(synk): the _dry_hook (post-backward decay of masked-out neurons'
    # weights/bias) is a training-time autograd side effect with no forward-pass
    # Pallas equivalent; dry_mask is kept only to mirror the module's buffers.

    print("KERNEL_OK")
</pallas_src>

<mosaic_0001>
module attributes {stable_mosaic.version = 11 : i64} {
  func.func @_linear_kernel(%arg0: i32, %arg1: i32, %arg2: i32, %arg3: memref<8x128xf32, #tpu.memory_space<vmem>>, %arg4: memref<128x128xf32, #tpu.memory_space<vmem>>, %arg5: memref<1x128xf32, #tpu.memory_space<vmem>>, %arg6: memref<8x128xf32, #tpu.memory_space<vmem>>) attributes {dimension_semantics = [#tpu.dimension_semantics<parallel>, #tpu.dimension_semantics<parallel>, #tpu.dimension_semantics<arbitrary>], iteration_bounds = array<i64: 1, 1, 1>, scalar_prefetch = 0 : i64, scratch_operands = 0 : i64, tpu.core_type = #tpu.core_type<tc>, window_params = [{transform_indices = @transform_0, window_bounds = array<i64: 8, 128>}, {transform_indices = @transform_1, window_bounds = array<i64: 128, 128>}, {transform_indices = @transform_2, window_bounds = array<i64: 1, 128>}, {transform_indices = @transform_3, window_bounds = array<i64: 8, 128>}]} {
    %c0_i32 = arith.constant 0 : i32
    %0 = arith.cmpi eq, %arg2, %c0_i32 : i32
    %1 = arith.extui %0 : i1 to i32
    %c0_i32_0 = arith.constant 0 : i32
    %2 = arith.cmpi ne, %1, %c0_i32_0 : i32
    scf.if %2 {
      %cst_10 = arith.constant 0.000000e+00 : f32
      %12 = vector.broadcast %cst_10 : f32 to vector<8x128xf32>
      %c0_11 = arith.constant 0 : index
      %c0_12 = arith.constant 0 : index
      %13 = vector.load %arg6[%c0_11, %c0_12] : memref<8x128xf32, #tpu.memory_space<vmem>>, vector<8x128xf32>
      tpu.vector_store %arg6[%c0_11, %c0_12], %12 {strides = array<i32>} : memref<8x128xf32, #tpu.memory_space<vmem>>, vector<8x128xf32>,
    } else {
    }
    %c0 = arith.constant 0 : index
    %c0_1 = arith.constant 0 : index
    %3 = vector.load %arg6[%c0, %c0_1] : memref<8x128xf32, #tpu.memory_space<vmem>>, vector<8x128xf32>
    %c0_2 = arith.constant 0 : index
    %c0_3 = arith.constant 0 : index
    %4 = vector.load %arg3[%c0_2, %c0_3] : memref<8x128xf32, #tpu.memory_space<vmem>>, vector<8x128xf32>
    %c0_4 = arith.constant 0 : index
    %c0_5 = arith.constant 0 : index
    %5 = vector.load %arg4[%c0_4, %c0_5] : memref<128x128xf32, #tpu.memory_space<vmem>>, vector<128x128xf32>
    %cst = arith.constant dense<0.000000e+00> : vector<8x128xf32>
    %6 = tpu.matmul %4, %5, %cst {dimension_numbers = #tpu.dot_dimension_numbers<[1], [0], [0], [1], [0, 0, 1, 1], [], []>} : vector<8x128xf32>, vector<128x128xf32>, vector<8x128xf32> -> vector<8x128xf32>
    %7 = arith.addf %3, %6 : vector<8x128xf32>
    %c0_6 = arith.constant 0 : index
    %c0_7 = arith.constant 0 : index
    %8 = vector.load %arg6[%c0_6, %c0_7] : memref<8x128xf32, #tpu.memory_space<vmem>>, vector<8x128xf32>
    tpu.vector_store %arg6[%c0_6, %c0_7], %7 {strides = array<i32>} : memref<8x128xf32, #tpu.memory_space<vmem>>, vector<8x128xf32>,
    %c0_i32_8 = arith.constant 0 : i32
    %9 = arith.cmpi eq, %arg2, %c0_i32_8 : i32
    %10 = arith.extui %9 : i1 to i32
    %c0_i32_9 = arith.constant 0 : i32
    %11 = arith.cmpi ne, %10, %c0_i32_9 : i32
    scf.if %11 {
      %c0_10 = arith.constant 0 : index
      %c0_11 = arith.constant 0 : index
      %12 = vector.load %arg6[%c0_10, %c0_11] : memref<8x128xf32, #tpu.memory_space<vmem>>, vector<8x128xf32>
      %c0_12 = arith.constant 0 : index
      %c0_13 = arith.constant 0 : index
      %13 = vector.load %arg5[%c0_12, %c0_13] : memref<1x128xf32, #tpu.memory_space<vmem>>, vector<1x128xf32>
      %14 = vector.broadcast %13 : vector<1x128xf32> to vector<8x128xf32>
      %15 = arith.addf %12, %14 : vector<8x128xf32>
      %c0_14 = arith.constant 0 : index
      %c0_15 = arith.constant 0 : index
      %16 = vector.load %arg6[%c0_14, %c0_15] : memref<8x128xf32, #tpu.memory_space<vmem>>, vector<8x128xf32>
      tpu.vector_store %arg6[%c0_14, %c0_15], %15 {strides = array<i32>} : memref<8x128xf32, #tpu.memory_space<vmem>>, vector<8x128xf32>,
    } else {
    }
    return
  }
  func.func @transform_0(%arg0: i32, %arg1: i32, %arg2: i32) -> (i32, i32) {
    %c0_i32 = arith.constant 0 : i32
    return %arg0, %arg2 : i32, i32
  }
  func.func @transform_1(%arg0: i32, %arg1: i32, %arg2: i32) -> (i32, i32) {
    %c0_i32 = arith.constant 0 : i32
    return %arg2, %arg1 : i32, i32
  }
  func.func @transform_2(%arg0: i32, %arg1: i32, %arg2: i32) -> (i32, i32) {
    %c0_i32 = arith.constant 0 : i32
    %c0_i32_0 = arith.constant 0 : i32
    return %c0_i32, %arg1 : i32, i32
  }
  func.func @transform_3(%arg0: i32, %arg1: i32, %arg2: i32) -> (i32, i32) {
    %c0_i32 = arith.constant 0 : i32
    return %arg0, %arg1 : i32, i32
  }
}

</mosaic_0001>

<bundles_post_ra>
// kernel: drying_linear_forward.1
= control target key start
LH: loop header
LB: loop body
LE: loop exit
PB: predicated region body
PF: predicated region fallthrough
CT: control target
= control target key end

     0   :  { %8 = vsyncpa [#allocation3], 0  ;;  %s197_s0 = inlined_call_operand.vmem [shape: f32[8,128], index: 0, kind: input, shape index: {}]   ;;  %s198_s1 = inlined_call_operand.hbm [shape: f32[128,128], index: 1, kind: input, shape index: {}]   ;;  %s199_s2 = inlined_call_operand.vmem [shape: f32[1,128], index: 2, kind: input, shape index: {}]   ;;  %s200_s3 = inlined_call_operand.hbm [shape: f32[8,128], index: 3, kind: output, shape index: {}]  }
   0x1   :  { %9 = vsyncpa [#allocation4], 0  ;;  %s16_s14 = sshll.u32 %s198_s1, 4  ;;  %s161_s15 = smov [#allocation2]   ;;  %s17_s14 = int_to_ptr.hbm [resolvable:$true] %s16_s14 }
   0x2   :  { %s18_s16 = sshll.u32 %s161_s15, 4  ;;  %s162_s17 = smov 128   ;;  %s19_s16 = int_to_ptr.vmem [resolvable:$true] %s18_s16 }
   0x3   :  { %s163_s18 = smov 8  }
   0x4   :  { %24 = dma.hbm_to_vmem [thread:$0]  %s17_s14, 2048, %s19_s16, [#allocation3], %s162_s17, %s162_s17, %s163_s18  }
   0x5   :  { %157 = dma.done.wait [#allocation3], 2048  }
   0x6   :  { %158 = vsyncadd [#allocation3], 4294965248  ;;  %v53_v0 = vld [vmem:[#allocation2 + $0x78] sm:$0xff]  ;;  %v52_v1 = vld [vmem:[#allocation2 + $0x70] sm:$0xff]  ;;  %s164_s22 = smov [#allocation5]   ;;  %s93_s26 = sshll.u32 %s200_s3, 4  ;;  %s94_s26 = int_to_ptr.hbm [resolvable:$true] %s93_s26 }
   0x7   :  { %54 = vmatpush.msra.mxu0 %v53_v0  ;;  %v51_v2 = vld [vmem:[#allocation2 + $0x68] sm:$0xff]  ;;  %v50_v3 = vld [vmem:[#allocation2 + $0x60] sm:$0xff]  ;;  %v49_v4 = vld [vmem:[#allocation2 + $0x58] sm:$0xff]  ;;  %s91_s23 = sshll.u32 %s164_s22, 4  ;;  %s92_s23 = int_to_ptr.vmem [resolvable:$true] %s91_s23 }
   0x8   :  { %v48_v5 = vld [vmem:[#allocation2 + $0x50] sm:$0xff]  ;;  %v47_v6 = vld [vmem:[#allocation2 + $0x48] sm:$0xff]  ;;  %v46_v7 = vld [vmem:[#allocation2 + $0x40] sm:$0xff] }
   0x9   :  { %55 = vmatpush.msra.mxu0 %v52_v1  ;;  %v45_v8 = vld [vmem:[#allocation2 + $0x38] sm:$0xff]  ;;  %v44_v9 = vld [vmem:[#allocation2 + $0x30] sm:$0xff]  ;;  %v43_v10 = vld [vmem:[#allocation2 + $0x28] sm:$0xff] }
   0xa   :  { %v42_v11 = vld [vmem:[#allocation2 + $0x20] sm:$0xff]  ;;  %v41_v12 = vld [vmem:[#allocation2 + $0x18] sm:$0xff]  ;;  %v40_v13 = vld [vmem:[#allocation2 + $0x10] sm:$0xff] }
   0xb   :  { %56 = vmatpush.msra.mxu0 %v51_v2  ;;  %v39_v14 = vld [vmem:[#allocation2 + $0x8] sm:$0xff]  ;;  %v38_v15 = vld [vmem:[#allocation2] sm:$0xff] }
   0xc   :  { %v37_v16 = vld [vmem:[%s197_s0] sm:$0xff] }
   0xd   :  { %57 = vmatpush.msra.mxu0 %v50_v3  ;;  %v108_v17 = vld [vmem:[%s199_s2] ss:$0 sm:$0xff] }
   0xf   :  { %58 = vmatpush.msra.mxu0 %v49_v4 }
  0x11   :  { %59 = vmatpush.msra.mxu0 %v48_v5 }
  0x13   :  { %60 = vmatpush.msra.mxu0 %v47_v6 }
  0x15   :  { %61 = vmatpush.msra.mxu0 %v46_v7 }
  0x17   :  { %62 = vmatpush.msra.mxu0 %v45_v8 }
  0x19   :  { %63 = vmatpush.msra.mxu0 %v44_v9 }
  0x1b   :  { %64 = vmatpush.msra.mxu0 %v43_v10 }
  0x1d   :  { %65 = vmatpush.msra.mxu0 %v42_v11 }
  0x1f   :  { %66 = vmatpush.msra.mxu0 %v41_v12 }
  0x21   :  { %67 = vmatpush.msra.mxu0 %v40_v13 }
  0x23   :  { %68 = vmatpush.msra.mxu0 %v39_v14 }
  0x25   :  { %69 = vmatpush.msra.mxu0 %v38_v15 }
  0x26   :  { %70 = vmatmul.f32.vlgmr.msra.gmra.mxu0 %v37_v16 }
  0xa3   :  { %v71_v18 = vpop.f32.mrf.mxu0 }
  0xa4   :  { %v84_v19 = vadd.f32 %v108_v17, %v71_v18 }
  0xa6   :  { %85 = vst [vmem:[#allocation5] sm:$0xff] %v84_v19 }
  0xa7   :  { %96 = dma.vmem_to_hbm [thread:$0]  %s92_s23, 128, %s94_s26, [#allocation4]  }
  0xa8   :  { %159 = dma.done.wait [#allocation4], 128  }
  0xa9   :  { %160 = vsyncadd [#allocation4], 4294967168 }
  0xaa   :  { %101 = vsyncpa [#allocation3], 1 }
  0xab   :  { %102 = vsyncpa [#allocation4], 1 }

</bundles_post_ra>
